<compile_context>
chip_gen: v7x
topology: tpu7x:2x2x1
jax: 0.10.0
libtpu: 0.0.40
codegen_flags: <defaults>
</compile_context>

<pallas_src>
import functools

import jax
import jax.numpy as jnp
from jax import lax
from jax.experimental import pallas as pl
from jax.experimental.pallas import tpu as pltpu


def _cdiv(a, b):
    return -(-a // b)


def _channel_attention_kernel(x_ref, w1_ref, w2_ref, o_ref, pooled_ref,
                              *acc_refs, hw, tile_lanes, n_tiles, block_b,
                              batch, unroll):
    """One (batch-block, spatial-tile) grid step.

    x_ref     : (block_b, C, tile_lanes)  spatial tile(s) of block_b images
    w1_ref    : (hidden, C)               fc1 1x1-conv weight (resident)
    w2_ref    : (C, hidden)               fc2 1x1-conv weight (resident)
    o_ref     : (block_b, 1, C)           attention rows (lane-dense store)
    pooled_ref: (C, 2*block_b) f32        columns [avg_0..avg_{Bb-1}, max_0..]
    acc_refs  : () or (sum_ref, max_ref)  (C, 128) f32 cross-tile accumulators
                                          (only allocated when n_tiles > 1)
    """
    k = pl.program_id(1)
    C = x_ref.shape[1]
    n_chunks = tile_lanes // 128
    inv_hw = 1.0 / hw

    # Chunk indices that are fully in-bounds on *every* spatial tile.  Only the
    # trailing chunk indices can be ragged (and only on the last tile).
    rem = hw - (n_tiles - 1) * tile_lanes        # valid lanes in the last tile
    n_safe = rem // 128

    if n_tiles > 1:
        sum_ref, max_ref = acc_refs

    n_cslabs = _cdiv(C, 128)                     # 128-channel register slabs

    for img in range(block_b):                   # static; block_b <= 16
        for s in range(n_cslabs):                # static
            c0 = s * 128
            cs = min(128, C - c0)

            # ---- per-tile register accumulators (<= 32 vregs live) ----
            if n_tiles > 1:
                first = k == 0
                # One scratch read per tile; on k==0 the (uninitialized) load
                # is masked away by the select.
                sum_acc = jnp.where(first, 0.0, sum_ref[c0:c0 + cs, :])
                max_acc = jnp.where(first, -jnp.inf, max_ref[c0:c0 + cs, :])
            else:
                sum_acc = jnp.zeros((cs, 128), jnp.float32)
                max_acc = jnp.full((cs, 128), -jnp.inf, jnp.float32)

            # ---- fully valid chunks: unmasked add/max, register carry ----
            def chunk_body(t, carry, img=img, c0=c0, cs=cs):
                s_a, m_a = carry
                off = pl.multiple_of(t * 128, 128)
                chunk = x_ref[img, c0:c0 + cs,
                              pl.ds(off, 128)].astype(jnp.float32)
                return s_a + chunk, jnp.maximum(m_a, chunk)

            if n_safe > 0:
                sum_acc, max_acc = lax.fori_loop(
                    0, n_safe, chunk_body, (sum_acc, max_acc),
                    unroll=min(unroll, n_safe))

            # ---- possibly-ragged trailing chunks: lane mask (all-true on
            #      interior tiles, trims the tail on the last tile) ----
            if n_safe < n_chunks:
                col_base = (k * tile_lanes
                            + lax.broadcasted_iota(jnp.int32, (cs, 128), 1))
                for t in range(n_safe, n_chunks):
                    off = t * 128
                    chunk = x_ref[img, c0:c0 + cs,
                                  off:off + 128].astype(jnp.float32)
                    valid = (col_base + off) < hw
                    sum_acc = sum_acc + jnp.where(valid, chunk, 0.0)
                    max_acc = jnp.maximum(max_acc,
                                          jnp.where(valid, chunk, -jnp.inf))

            # ---- write back (interior tiles) or reduce (last tile) ----
            def _write_pooled(sum_acc=sum_acc, max_acc=max_acc,
                              c0=c0, cs=cs, img=img):
                pooled_ref[c0:c0 + cs, img:img + 1] = (
                    jnp.sum(sum_acc, axis=-1, keepdims=True) * inv_hw)
                pooled_ref[c0:c0 + cs,
                           block_b + img:block_b + img + 1] = (
                    jnp.max(max_acc, axis=-1, keepdims=True))

            if n_tiles > 1:
                @pl.when(k < n_tiles - 1)
                def _store(sum_acc=sum_acc, max_acc=max_acc, c0=c0, cs=cs):
                    sum_ref[c0:c0 + cs, :] = sum_acc   # one write per tile
                    max_ref[c0:c0 + cs, :] = max_acc

                pl.when(k == n_tiles - 1)(_write_pooled)
            else:
                _write_pooled()

    # ---- fused epilogue: one fc1 matmul + ReLU + one fc2 matmul for the
    #      avg AND max paths of every image in the block, then sigmoid ----
    def _finalize():
        pooled = pooled_ref[...]                                   # (C, 2*Bb)
        h = jnp.dot(w1_ref[...], pooled,
                    preferred_element_type=jnp.float32)            # (hid, 2Bb)
        h = jnp.maximum(h, 0.0)
        out2 = jnp.dot(w2_ref[...], h,
                       preferred_element_type=jnp.float32)         # (C, 2Bb)
        att_cols = jax.nn.sigmoid(out2[:, :block_b]
                                  + out2[:, block_b:])             # (C, Bb)

        if batch % block_b != 0:
            # Zero out phantom images of a partial last batch block so their
            # (undefined) values cannot leak NaNs through the transpose below.
            nvalid = batch - pl.program_id(0) * block_b
            col_ok = lax.broadcasted_iota(jnp.int32, (C, block_b), 1) < nvalid
            att_cols = jnp.where(col_ok, att_cols, 0.0)

        # Lane-dense output rows: transpose (C, Bb) -> (Bb, C) with a trans-B
        # identity matmul on the (otherwise idle) MXU.
        eye = (lax.broadcasted_iota(jnp.int32, (block_b, block_b), 0)
               == lax.broadcasted_iota(jnp.int32, (block_b, block_b), 1)
               ).astype(jnp.float32)
        att_rows = lax.dot_general(
            eye, att_cols,
            dimension_numbers=(((1,), (1,)), ((), ())),
            preferred_element_type=jnp.float32)                    # (Bb, C)
        o_ref[...] = att_rows.reshape(block_b, 1, C).astype(o_ref.dtype)

    if n_tiles > 1:
        pl.when(k == n_tiles - 1)(_finalize)
    else:
        _finalize()


def channel_attention(x, w1, w2, *, max_tile_bytes=4 * 1024 * 1024,
                      max_batch_block=16, unroll=8):
    """x: (B, C, H, W); w1: (C//ratio, C); w2: (C, C//ratio) -> (B, C, 1, 1)."""
    B, C, H, W = x.shape
    hidden = w1.shape[0]
    hw = H * W
    itemsize = x.dtype.itemsize

    total_chunks = _cdiv(hw, 128)
    chunk_cap = max(1, max_tile_bytes // (C * 128 * itemsize))

    if total_chunks <= chunk_cap:
        # Small/medium feature maps: whole image in one spatial tile; fold
        # several images per grid step to amortize per-step overhead.
        n_tiles = 1
        tile_lanes = total_chunks * 128
        img_bytes = C * tile_lanes * itemsize
        block_b = int(min(B, max_batch_block,
                          max(1, max_tile_bytes // img_bytes)))
    else:
        # Large feature maps: one image per step, balanced spatial tiles,
        # register accumulation with one scratch round-trip per tile.
        n_tiles = _cdiv(total_chunks, chunk_cap)
        chunks_per_tile = _cdiv(total_chunks, n_tiles)
        tile_lanes = chunks_per_tile * 128
        n_tiles = _cdiv(total_chunks, chunks_per_tile)
        block_b = 1

    num_b_blocks = _cdiv(B, block_b)
    # No host-side padding: ragged H*W handled by the in-kernel lane mask on a
    # partial last block.
    x3 = x.reshape(B, C, hw)

    kernel = functools.partial(
        _channel_attention_kernel, hw=hw, tile_lanes=tile_lanes,
        n_tiles=n_tiles, block_b=block_b, batch=B, unroll=unroll)

    scratch = [pltpu.VMEM((C, 2 * block_b), jnp.float32)]   # pooled avg | max
    if n_tiles > 1:
        scratch += [pltpu.VMEM((C, 128), jnp.float32),      # cross-tile sum
                    pltpu.VMEM((C, 128), jnp.float32)]      # cross-tile max

    x_block_bytes = block_b * C * tile_lanes * itemsize
    vmem_limit = int(min(96 * 1024 * 1024,
                         max(16 * 1024 * 1024,
                             2 * x_block_bytes + 8 * 1024 * 1024)))

    out = pl.pallas_call(
        kernel,
        out_shape=jax.ShapeDtypeStruct((B, 1, C), x.dtype),
        grid_spec=pltpu.PrefetchScalarGridSpec(
            num_scalar_prefetch=0,
            grid=(num_b_blocks, n_tiles),          # spatial reduction axis last
            in_specs=[
                pl.BlockSpec((block_b, C, tile_lanes), lambda b, k: (b, 0, k)),
                pl.BlockSpec((hidden, C), lambda b, k: (0, 0)),
                pl.BlockSpec((C, hidden), lambda b, k: (0, 0)),
            ],
            out_specs=pl.BlockSpec((block_b, 1, C), lambda b, k: (b, 0, 0)),
            scratch_shapes=scratch,
        ),
        compiler_params=pltpu.CompilerParams(
            dimension_semantics=("parallel", "arbitrary"),
            vmem_limit_bytes=vmem_limit,
        ),
    )(x3, w1, w2)
    return out.reshape(B, C, 1, 1)


if __name__ == "__main__":
    key = jax.random.PRNGKey(0)
    B, C, ratio = 2, 64, 16                 # in_planes=64, ratio=16 -> hidden=4
    hidden = C // ratio
    kx, k1, k2, k3, k4 = jax.random.split(key, 5)

    # Deterministic synthetic 1x1-conv weights (bias=False, like the module).
    w1 = jax.random.normal(k1, (hidden, C), jnp.float32) * (1.0 / jnp.sqrt(C))
    w2 = jax.random.normal(k2, (C, hidden), jnp.float32) * (1.0 / jnp.sqrt(hidden))

    def ref_fn(xv):
        avg = jnp.mean(xv, axis=(2, 3))                    # (B, C)
        mx = jnp.max(xv, axis=(2, 3))                      # (B, C)
        mlp = lambda p: jnp.maximum(p @ w1.T, 0.0) @ w2.T
        return jax.nn.sigmoid(mlp(avg) + mlp(mx)).reshape(
            xv.shape[0], xv.shape[1], 1, 1)

    # 1) Small-feature-map regime: whole image in one tile, images batched
    #    per grid step, unmasked fori_loop chunk path.
    x = jax.random.normal(kx, (B, C, 16, 16), jnp.float32)
    out = channel_attention(x, w1, w2)
    jax.block_until_ready(out)
    assert out.shape == (B, C, 1, 1)
    assert jnp.allclose(out, ref_fn(x), atol=2e-5), "mismatch (batched small)"

    # 2) Ragged spatial size (H*W = 99 < 128): partial block + in-kernel mask,
    #    no host-side padding.
    x2 = jax.random.normal(k3, (3, C, 9, 11), jnp.float32)
    out2 = channel_attention(x2, w1, w2)
    jax.block_until_ready(out2)
    assert jnp.allclose(out2, ref_fn(x2), atol=2e-5), "mismatch (ragged HW)"

    # 3) Multi-tile spatial reduction (forced small tile cap): register
    #    accumulators + one scratch round-trip per tile + ragged last tile.
    x3 = jax.random.normal(k4, (B, C, 15, 20), jnp.float32)      # H*W = 300
    out3 = channel_attention(x3, w1, w2, max_tile_bytes=C * 128 * 4)
    jax.block_until_ready(out3)
    assert jnp.allclose(out3, ref_fn(x3), atol=2e-5), "mismatch (multi-tile)"

    print("KERNEL_OK")
</pallas_src>

<mosaic_0001>
module attributes {stable_mosaic.version = 11 : i64} {
  func.func @_channel_attention_kernel(%arg0: i32, %arg1: i32, %arg2: memref<2x64x256xf32, #tpu.memory_space<vmem>>, %arg3: memref<4x64xf32, #tpu.memory_space<vmem>>, %arg4: memref<64x4xf32, #tpu.memory_space<vmem>>, %arg5: memref<2x1x64xf32, #tpu.memory_space<vmem>>, %arg6: memref<64x4xf32, #tpu.memory_space<vmem>>) attributes {dimension_semantics = [#tpu.dimension_semantics<parallel>, #tpu.dimension_semantics<arbitrary>], iteration_bounds = array<i64: 1, 1>, scalar_prefetch = 0 : i64, scratch_operands = 1 : i64, tpu.core_type = #tpu.core_type<tc>, window_params = [{transform_indices = @transform_0, window_bounds = array<i64: 2, 64, 256>}, {pipeline_mode = #tpu.pipeline_mode<synchronous>, transform_indices = @transform_1, window_bounds = array<i64: 4, 64>}, {pipeline_mode = #tpu.pipeline_mode<synchronous>, transform_indices = @transform_2, window_bounds = array<i64: 64, 4>}, {transform_indices = @transform_3, window_bounds = array<i64: 2, 1, 64>}]} {
    %cst = arith.constant 0.000000e+00 : f32
    %0 = vector.broadcast %cst : f32 to vector<64x128xf32>
    %cst_0 = arith.constant 0xFF800000 : f32
    %1 = vector.broadcast %cst_0 : f32 to vector<64x128xf32>
    %c0_i32 = arith.constant 0 : i32
    %c128_i32 = arith.constant 128 : i32
    %2 = arith.muli %c0_i32, %c128_i32 : i32
    %3 = tpu.assume_multiple %2, 128 : i32
    %c0 = arith.constant 0 : index
    %c0_1 = arith.constant 0 : index
    %4 = arith.index_cast %3 : i32 to index
    %5 = vector.load %arg2[%c0, %c0_1, %4] : memref<2x64x256xf32, #tpu.memory_space<vmem>>, vector<1x64x128xf32>
    %6 = vector.shape_cast %5 : vector<1x64x128xf32> to vector<64x128xf32>
    %7 = arith.addf %0, %6 : vector<64x128xf32>
    %8 = arith.maximumf %1, %6 : vector<64x128xf32>
    %c1_i32 = arith.constant 1 : i32
    %c128_i32_2 = arith.constant 128 : i32
    %9 = arith.muli %c1_i32, %c128_i32_2 : i32
    %10 = tpu.assume_multiple %9, 128 : i32
    %c0_3 = arith.constant 0 : index
    %c0_4 = arith.constant 0 : index
    %11 = arith.index_cast %10 : i32 to index
    %12 = vector.load %arg2[%c0_3, %c0_4, %11] : memref<2x64x256xf32, #tpu.memory_space<vmem>>, vector<1x64x128xf32>
    %13 = vector.shape_cast %12 : vector<1x64x128xf32> to vector<64x128xf32>
    %14 = arith.addf %7, %13 : vector<64x128xf32>
    %15 = arith.maximumf %8, %13 : vector<64x128xf32>
    %c2_i32 = arith.constant 2 : i32
    %cst_5 = arith.constant dense<0.000000e+00> : vector<64xf32>
    %16 = vector.multi_reduction <add>, %14, %cst_5 [1] : vector<64x128xf32> to vector<64xf32>
    %17 = vector.shape_cast %16 : vector<64xf32> to vector<64x1xf32>
    %cst_6 = arith.constant 3.906250e-03 : f32
    %18 = vector.broadcast %cst_6 : f32 to vector<64x1xf32>
    %19 = arith.mulf %17, %18 : vector<64x1xf32>
    %c0_7 = arith.constant 0 : index
    %c0_8 = arith.constant 0 : index
    %20 = vector.load %arg6[%c0_7, %c0_8] : memref<64x4xf32, #tpu.memory_space<vmem>>, vector<64x1xf32>
    tpu.vector_store %arg6[%c0_7, %c0_8], %19 {strides = array<i32>} : memref<64x4xf32, #tpu.memory_space<vmem>>, vector<64x1xf32>,
    %cst_9 = arith.constant dense<0xFF800000> : vector<64xf32>
    %21 = vector.multi_reduction <maximumf>, %15, %cst_9 [1] : vector<64x128xf32> to vector<64xf32>
    %22 = vector.shape_cast %21 : vector<64xf32> to vector<64x1xf32>
    %c0_10 = arith.constant 0 : index
    %c2 = arith.constant 2 : index
    %23 = vector.load %arg6[%c0_10, %c2] : memref<64x4xf32, #tpu.memory_space<vmem>>, vector<64x1xf32>
    tpu.vector_store %arg6[%c0_10, %c2], %22 {strides = array<i32>} : memref<64x4xf32, #tpu.memory_space<vmem>>, vector<64x1xf32>,
    %cst_11 = arith.constant 0.000000e+00 : f32
    %24 = vector.broadcast %cst_11 : f32 to vector<64x128xf32>
    %cst_12 = arith.constant 0xFF800000 : f32
    %25 = vector.broadcast %cst_12 : f32 to vector<64x128xf32>
    %c0_i32_13 = arith.constant 0 : i32
    %c128_i32_14 = arith.constant 128 : i32
    %26 = arith.muli %c0_i32_13, %c128_i32_14 : i32
    %27 = tpu.assume_multiple %26, 128 : i32
    %c1 = arith.constant 1 : index
    %c0_15 = arith.constant 0 : index
    %28 = arith.index_cast %27 : i32 to index
    %29 = vector.load %arg2[%c1, %c0_15, %28] : memref<2x64x256xf32, #tpu.memory_space<vmem>>, vector<1x64x128xf32>
    %30 = vector.shape_cast %29 : vector<1x64x128xf32> to vector<64x128xf32>
    %31 = arith.addf %24, %30 : vector<64x128xf32>
    %32 = arith.maximumf %25, %30 : vector<64x128xf32>
    %c1_i32_16 = arith.constant 1 : i32
    %c128_i32_17 = arith.constant 128 : i32
    %33 = arith.muli %c1_i32_16, %c128_i32_17 : i32
    %34 = tpu.assume_multiple %33, 128 : i32
    %c1_18 = arith.constant 1 : index
    %c0_19 = arith.constant 0 : index
    %35 = arith.index_cast %34 : i32 to index
    %36 = vector.load %arg2[%c1_18, %c0_19, %35] : memref<2x64x256xf32, #tpu.memory_space<vmem>>, vector<1x64x128xf32>
    %37 = vector.shape_cast %36 : vector<1x64x128xf32> to vector<64x128xf32>
    %38 = arith.addf %31, %37 : vector<64x128xf32>
    %39 = arith.maximumf %32, %37 : vector<64x128xf32>
    %c2_i32_20 = arith.constant 2 : i32
    %cst_21 = arith.constant dense<0.000000e+00> : vector<64xf32>
    %40 = vector.multi_reduction <add>, %38, %cst_21 [1] : vector<64x128xf32> to vector<64xf32>
    %41 = vector.shape_cast %40 : vector<64xf32> to vector<64x1xf32>
    %cst_22 = arith.constant 3.906250e-03 : f32
    %42 = vector.broadcast %cst_22 : f32 to vector<64x1xf32>
    %43 = arith.mulf %41, %42 : vector<64x1xf32>
    %c0_23 = arith.constant 0 : index
    %c1_24 = arith.constant 1 : index
    %44 = vector.load %arg6[%c0_23, %c1_24] : memref<64x4xf32, #tpu.memory_space<vmem>>, vector<64x1xf32>
    tpu.vector_store %arg6[%c0_23, %c1_24], %43 {strides = array<i32>} : memref<64x4xf32, #tpu.memory_space<vmem>>, vector<64x1xf32>,
    %cst_25 = arith.constant dense<0xFF800000> : vector<64xf32>
    %45 = vector.multi_reduction <maximumf>, %39, %cst_25 [1] : vector<64x128xf32> to vector<64xf32>
    %46 = vector.shape_cast %45 : vector<64xf32> to vector<64x1xf32>
    %c0_26 = arith.constant 0 : index
    %c3 = arith.constant 3 : index
    %47 = vector.load %arg6[%c0_26, %c3] : memref<64x4xf32, #tpu.memory_space<vmem>>, vector<64x1xf32>
    tpu.vector_store %arg6[%c0_26, %c3], %46 {strides = array<i32>} : memref<64x4xf32, #tpu.memory_space<vmem>>, vector<64x1xf32>,
    %c0_27 = arith.constant 0 : index
    %c0_28 = arith.constant 0 : index
    %48 = vector.load %arg6[%c0_27, %c0_28] : memref<64x4xf32, #tpu.memory_space<vmem>>, vector<64x4xf32>
    %c0_29 = arith.constant 0 : index
    %c0_30 = arith.constant 0 : index
    %49 = vector.load %arg3[%c0_29, %c0_30] : memref<4x64xf32, #tpu.memory_space<vmem>>, vector<4x64xf32>
    %cst_31 = arith.constant dense<0.000000e+00> : vector<4x4xf32>
    %50 = tpu.matmul %49, %48, %cst_31 {dimension_numbers = #tpu.dot_dimension_numbers<[1], [0], [0], [1], [0, 0, 1, 1], [], []>} : vector<4x64xf32>, vector<64x4xf32>, vector<4x4xf32> -> vector<4x4xf32>
    %cst_32 = arith.constant 0.000000e+00 : f32
    %51 = vector.broadcast %cst_32 : f32 to vector<4x4xf32>
    %52 = arith.maximumf %50, %51 : vector<4x4xf32>
    %c0_33 = arith.constant 0 : index
    %c0_34 = arith.constant 0 : index
    %53 = vector.load %arg4[%c0_33, %c0_34] : memref<64x4xf32, #tpu.memory_space<vmem>>, vector<64x4xf32>
    %cst_35 = arith.constant dense<0.000000e+00> : vector<64x4xf32>
    %54 = tpu.matmul %53, %52, %cst_35 {dimension_numbers = #tpu.dot_dimension_numbers<[1], [0], [0], [1], [0, 0, 1, 1], [], []>} : vector<64x4xf32>, vector<4x4xf32>, vector<64x4xf32> -> vector<64x4xf32>
    %55 = vector.extract_strided_slice %54 {offsets = [0, 0], sizes = [64, 2], strides = [1, 1]} : vector<64x4xf32> to vector<64x2xf32>
    %56 = vector.extract_strided_slice %54 {offsets = [0, 2], sizes = [64, 2], strides = [1, 1]} : vector<64x4xf32> to vector<64x2xf32>
    %57 = arith.addf %55, %56 : vector<64x2xf32>
    %58 = arith.negf %57 : vector<64x2xf32>
    %59 = math.exp %58 : vector<64x2xf32>
    %cst_36 = arith.constant 1.000000e+00 : f32
    %60 = vector.broadcast %cst_36 : f32 to vector<64x2xf32>
    %61 = arith.addf %60, %59 : vector<64x2xf32>
    %62 = arith.divf %60, %61 : vector<64x2xf32>
    %63 = tpu.iota {dimensions = array<i32: 0>} : vector<2x2xi32>
    %64 = tpu.iota {dimensions = array<i32: 1>} : vector<2x2xi32>
    %65 = arith.cmpi eq, %63, %64 : vector<2x2xi32>
    %66 = arith.extui %65 : vector<2x2xi1> to vector<2x2xi32>
    %67 = arith.sitofp %66 : vector<2x2xi32> to vector<2x2xf32>
    %cst_37 = arith.constant dense<0.000000e+00> : vector<2x64xf32>
    %68 = tpu.matmul %67, %62, %cst_37 {dimension_numbers = #tpu.dot_dimension_numbers<[1], [1], [0], [0], [0, 0, 1, 0], [], []>} : vector<2x2xf32>, vector<64x2xf32>, vector<2x64xf32> -> vector<2x64xf32>
    %69 = vector.shape_cast %68 : vector<2x64xf32> to vector<2x1x64xf32>
    %c0_38 = arith.constant 0 : index
    %c0_39 = arith.constant 0 : index
    %c0_40 = arith.constant 0 : index
    %70 = vector.load %arg5[%c0_38, %c0_39, %c0_40] : memref<2x1x64xf32, #tpu.memory_space<vmem>>, vector<2x1x64xf32>
    tpu.vector_store %arg5[%c0_38, %c0_39, %c0_40], %69 {strides = array<i32>} : memref<2x1x64xf32, #tpu.memory_space<vmem>>, vector<2x1x64xf32>,
    return
  }
  func.func @transform_0(%arg0: i32, %arg1: i32) -> (i32, i32, i32) {
    %c0_i32 = arith.constant 0 : i32
    %c0_i32_0 = arith.constant 0 : i32
    return %arg0, %c0_i32, %arg1 : i32, i32, i32
  }
  func.func @transform_1(%arg0: i32, %arg1: i32) -> (i32, i32) {
    %c0_i32 = arith.constant 0 : i32
    %c0_i32_0 = arith.constant 0 : i32
    %c0_i32_1 = arith.constant 0 : i32
    return %c0_i32, %c0_i32_0 : i32, i32
  }
  func.func @transform_2(%arg0: i32, %arg1: i32) -> (i32, i32) {
    %c0_i32 = arith.constant 0 : i32
    %c0_i32_0 = arith.constant 0 : i32
    %c0_i32_1 = arith.constant 0 : i32
    return %c0_i32, %c0_i32_0 : i32, i32
  }
  func.func @transform_3(%arg0: i32, %arg1: i32) -> (i32, i32, i32) {
    %c0_i32 = arith.constant 0 : i32
    %c0_i32_0 = arith.constant 0 : i32
    %c0_i32_1 = arith.constant 0 : i32
    return %arg0, %c0_i32, %c0_i32_0 : i32, i32, i32
  }
}

</mosaic_0001>

<bundles_post_ra>
// kernel: tpu_custom_call.1
= control target key start
LH: loop header
LB: loop body
LE: loop exit
PB: predicated region body
PF: predicated region fallthrough
CT: control target
= control target key end

     0   :  { %8 = vsyncpa [#allocation4], 0  ;;  %s1073_s0 = inlined_call_operand.hbm [shape: f32[2,64,256], index: 0, kind: input, shape index: {}]   ;;  %s1074_s1 = inlined_call_operand.vmem [shape: f32[4,64], index: 1, kind: input, shape index: {}]   ;;  %s1075_s2 = inlined_call_operand.vmem [shape: f32[64,4], index: 2, kind: input, shape index: {}]   ;;  %s1076_s3 = inlined_call_operand.hbm [shape: f32[2,1,64], index: 3, kind: output, shape index: {}]  }
   0x1   :  { %9 = vsyncpa [#allocation5], 0  ;;  %s923_s12 = smov [#allocation3]   ;;  %s875_s16 = scalar_lea.hbm %s1073_s0, 4096 }
   0x2   :  { %s15_s13 = sshll.u32 %s923_s12, 4  ;;  %p876_p0 = scmp.ne.s32.totalorder %s1073_s0, %s875_s16  ;;  %s16_s13 = int_to_ptr.vmem [resolvable:$true] %s15_s13 }
   0x3   :  { %p879_p1 = scmp.lt.u32.totalorder %s875_s16, %s1073_s0 }
   0x5   :  { %p881_p2 = pnand %p879_p1, %p876_p0 }
   0x7   :  { %884 = shalt.err (!%p881_p2)
}
   0x8   :  { %s885_s21 = scalar_lea.vmem %s16_s13, 4096  ;;  %p890_p4 = scmp.lt.s32.totalorder %s16_s13, %s16_s13 }
   0x9   :  { %p886_p3 = scmp.ne.s32.totalorder %s16_s13, %s885_s21  ;;  %p891_p5 = scmp.lt.s32.totalorder %s885_s21, %s885_s21 }
   0xb   :  { %p892_p6 = por %p891_p5, %p890_p4 }
   0xd   :  { %p893_p7 = pnand %p892_p6, %p886_p3 }
   0xf   :  { %896 = shalt.err (!%p893_p7)
}
  0x10   :  { %s924_s22 = smov 256   ;;  %s925_s23 = smov 16  }
  0x11   :  { %21 = dma.hbm_to_vmem [thread:$0]  %s1073_s0, 4096, %s16_s13, [#allocation4], %s924_s22, %s924_s22, %s925_s23  }
  0x12   :  { %919 = dma.done.wait [#allocation4], 4096  }
  0x13   :  { %920 = vsyncadd [#allocation4], 4294963200  ;;  %v131_v0 = vld [vmem:[#allocation3 + $0x80] sm:$0xff]  ;;  %v150_v1 = vld [vmem:[#allocation3 + $0x88] sm:$0xff]  ;;  %v926_v51 = vmov 0.0|0.0   ;;  %vm927_vm0 = vmmov 0  }
  0x14   :  { %v29_v2 = vld [vmem:[#allocation3] sm:$0xff]  ;;  %v158_v3 = vadd.f32 %v150_v1, %v131_v0  ;;  %v46_v4 = vld [vmem:[#allocation3 + $0x8] sm:$0xff]  ;;  %v132_v5 = vld [vmem:[#allocation3 + $0x90] sm:$0xff]  ;;  %v166_v21 = vmax.f32 %v131_v0, %v150_v1  ;;  %805 = vmatprep.subr.bf16.mxu0 %v926_v51  ;;  %817 = vmatprep.subr.bf16.mxu1 %v926_v51  ;;  %v928_v1 = vmov 0.0   ;;  %vm94_vm1 = vcmask 7168   ;;  %s929_s15 = smov 126  }
  0x15   :  { %v151_v6 = vld [vmem:[#allocation3 + $0x98] sm:$0xff]  ;;  %v54_v7 = vadd.f32 %v46_v4, %v29_v2  ;;  %v30_v8 = vld [vmem:[#allocation3 + $0x10] sm:$0xff]  ;;  %v62_v13 = vmax.f32 %v29_v2, %v46_v4  ;;  %v31_v16 = vld [vmem:[#allocation3 + $0x20] sm:$0xff]  ;;  %769 = vmatprep.mubr.msk.f32.mxu0 %vm927_vm0, %v928_v1  ;;  %802 = vmatprep.mubr.msk.f32.mxu1 %vm927_vm0, %v928_v1  ;;  %vm119_vm2 = vcmask 23568   ;;  %vm198_vm3 = vcmask 15368  }
  0x16   :  { %v47_v9 = vld [vmem:[#allocation3 + $0x18] sm:$0xff]  ;;  %174 = vadd.xlane.f32.xlu1 %v158_v3  ;;  %v159_v10 = vadd.f32 %v151_v6, %v132_v5  ;;  %v32_v14 = vld [vmem:[#allocation3 + $0x30] sm:$0xff]  ;;  %v48_v17 = vld [vmem:[#allocation3 + $0x28] sm:$0xff]  ;;  %v167_v20 = vmax.f32 %v132_v5, %v151_v6  ;;  %vm223_vm4 = vcmask 31768   ;;  %vm241_vm5 = vcmask 523264  }
  0x17   :  { %70 = vadd.xlane.f32.xlu0 %v54_v7  ;;  %v55_v11 = vadd.f32 %v47_v9, %v30_v8  ;;  %v63_v12 = vmax.f32 %v30_v8, %v47_v9  ;;  %v49_v15 = vld [vmem:[#allocation3 + $0x38] sm:$0xff]  ;;  %v56_v19 = vadd.f32 %v48_v17, %v31_v16  ;;  %v134_v22 = vld [vmem:[#allocation3 + $0xb0] sm:$0xff]  ;;  %v133_v24 = vld [vmem:[#allocation3 + $0xa0] sm:$0xff]  ;;  %v64_v29 = vmax.f32 %v31_v16, %v48_v17 }
  0x18   :  { %v57_v18 = vadd.f32 %v49_v15, %v32_v14  ;;  %v153_v23 = vld [vmem:[#allocation3 + $0xb8] sm:$0xff]  ;;  %v152_v25 = vld [vmem:[#allocation3 + $0xa8] sm:$0xff]  ;;  %v65_v28 = vmax.f32 %v32_v14, %v49_v15  ;;  %v34_v30 = vld [vmem:[#allocation3 + $0x50] sm:$0xff]  ;;  %vm324_vm6 = vcmask 31744   ;;  %vm349_vm7 = vcmask 1043456  }
  0x19   :  { %v161_v26 = vadd.f32 %v153_v23, %v134_v22  ;;  %v160_v27 = vadd.f32 %v152_v25, %v133_v24  ;;  %v51_v31 = vld [vmem:[#allocation3 + $0x58] sm:$0xff]  ;;  %v33_v32 = vld [vmem:[#allocation3 + $0x40] sm:$0xff]  ;;  %v50_v33 = vld [vmem:[#allocation3 + $0x48] sm:$0xff]  ;;  %v169_v36 = vmax.f32 %v134_v22, %v153_v23  ;;  %v168_v37 = vmax.f32 %v133_v24, %v152_v25 }
  0x1a   :  { %176 = vadd.xlane.f32.xlu1 %v159_v10  ;;  %v59_v34 = vadd.f32 %v51_v31, %v34_v30  ;;  %v58_v35 = vadd.f32 %v50_v33, %v33_v32  ;;  %v136_v38 = vld [vmem:[#allocation3 + $0xd0] sm:$0xff]  ;;  %v155_v39 = vld [vmem:[#allocation3 + $0xd8] sm:$0xff]  ;;  %v135_v40 = vld [vmem:[#allocation3 + $0xc0] sm:$0xff]  ;;  %v67_v44 = vmax.f32 %v34_v30, %v51_v31  ;;  %v66_v45 = vmax.f32 %v33_v32, %v50_v33 }
  0x1b   :  { %72 = vadd.xlane.f32.xlu0 %v55_v11  ;;  %v154_v41 = vld [vmem:[#allocation3 + $0xc8] sm:$0xff]  ;;  %v163_v42 = vadd.f32 %v155_v39, %v136_v38  ;;  %v36_v46 = vld [vmem:[#allocation3 + $0x70] sm:$0xff]  ;;  %v53_v47 = vld [vmem:[#allocation3 + $0x78] sm:$0xff]  ;;  %v171_v53 = vmax.f32 %v136_v38, %v155_v39  ;;  %vm553_vm8 = vcmask 15360   ;;  %vm676_vm11 = vcmask 516096  }
  0x1c   :  { %v162_v43 = vadd.f32 %v154_v41, %v135_v40  ;;  %v35_v48 = vld [vmem:[#allocation3 + $0x60] sm:$0xff]  ;;  %v52_v49 = vld [vmem:[#allocation3 + $0x68] sm:$0xff]  ;;  %v61_v50 = vadd.f32 %v53_v47, %v36_v46  ;;  %v170_v54 = vmax.f32 %v135_v40, %v154_v41  ;;  %v138_v55 = vld [vmem:[#allocation3 + $0xf0] sm:$0xff]  ;;  %v69_v61 = vmax.f32 %v36_v46, %v53_v47 }
  0x1d   :  { %v60_v52 = vadd.f32 %v52_v49, %v35_v48  ;;  %v157_v56 = vld [vmem:[#allocation3 + $0xf8] sm:$0xff]  ;;  %v137_v57 = vld [vmem:[#allocation3 + $0xe0] sm:$0xff]  ;;  %v156_v58 = vld [vmem:[#allocation3 + $0xe8] sm:$0xff]  ;;  %v68_v62 = vmax.f32 %v35_v48, %v52_v49 }
  0x1e   :  { %105 = vmax.xlane.f32.xlu1 %v63_v12  ;;  %v165_v59 = vadd.f32 %v157_v56, %v138_v55  ;;  %v164_v60 = vadd.f32 %v156_v58, %v137_v57  ;;  %v173_v63 = vmax.f32 %v138_v55, %v157_v56  ;;  %v172_v0 = vmax.f32 %v137_v57, %v156_v58  ;;  %vm1042_vm9 = vmpackc.low %vm553_vm8, %vm553_vm8 }
  0x1f   :  { %103 = vmax.xlane.f32.xlu0 %v62_v13 }
  0x22   :  { %76 = vadd.xlane.f32.xlu1 %v57_v18 }
  0x23   :  { %74 = vadd.xlane.f32.xlu0 %v56_v19 }
  0x26   :  { %209 = vmax.xlane.f32.xlu1 %v167_v20 }
  0x27   :  { %207 = vmax.xlane.f32.xlu0 %v166_v21 }
  0x2a   :  { %180 = vadd.xlane.f32.xlu1 %v161_v26 }
  0x2b   :  { %178 = vadd.xlane.f32.xlu0 %v160_v27 }
  0x2e   :  { %109 = vmax.xlane.f32.xlu1 %v65_v28 }
  0x2f   :  { %107 = vmax.xlane.f32.xlu0 %v64_v29 }
  0x32   :  { %80 = vadd.xlane.f32.xlu1 %v59_v34 }
  0x33   :  { %78 = vadd.xlane.f32.xlu0 %v58_v35 }
  0x36   :  { %213 = vmax.xlane.f32.xlu1 %v169_v36 }
  0x37   :  { %211 = vmax.xlane.f32.xlu0 %v168_v37 }
  0x3a   :  { %184 = vadd.xlane.f32.xlu1 %v163_v42 }
  0x3b   :  { %182 = vadd.xlane.f32.xlu0 %v162_v43 }
  0x3e   :  { %113 = vmax.xlane.f32.xlu1 %v67_v44 }
  0x3f   :  { %111 = vmax.xlane.f32.xlu0 %v66_v45 }
  0x42   :  { %84 = vadd.xlane.f32.xlu1 %v61_v50 }
  0x43   :  { %82 = vadd.xlane.f32.xlu0 %v60_v52 }
  0x46   :  { %217 = vmax.xlane.f32.xlu1 %v171_v53 }
  0x47   :  { %215 = vmax.xlane.f32.xlu0 %v170_v54 }
  0x4a   :  { %188 = vadd.xlane.f32.xlu1 %v165_v59 }
  0x4b   :  { %186 = vadd.xlane.f32.xlu0 %v164_v60 }
  0x4e   :  { %117 = vmax.xlane.f32.xlu1 %v69_v61 }
  0x4f   :  { %115 = vmax.xlane.f32.xlu0 %v68_v62 }
  0x52   :  { %221 = vmax.xlane.f32.xlu1 %v173_v63  ;;  %v240_v63 = vld [vmem:[%s1074_s1] sm:$0xf] }
  0x53   :  { %219 = vmax.xlane.f32.xlu0 %v172_v0  ;;  %v316_v0 = vld [vmem:[%s1075_s2] sm:$0xff] }
  0xa3   :  { %v175_v2 = vpop.xlane.xlu1 %174 }
  0xa4   :  { %v71_v3 = vpop.xlane.xlu0 %70  ;;  %v190_v10 = vmul.f32 0.00390625, %v175_v2 }
  0xa5   :  { %v86_v4 = vmul.f32 0.00390625, %v71_v3 }
  0xa7   :  { %95 = vst.msk [vmem:[#allocation2] sm:$0xff] %vm94_vm1, %v86_v4  ;;  %v177_v5 = vpop.xlane.xlu1 %176 }
  0xa8   :  { %v73_v6 = vpop.xlane.xlu0 %72  ;;  %v191_v8 = vmul.f32 0.00390625, %v177_v5  ;;  %v317_v5 = vld [vmem:[%s1075_s2 + $0x8] sm:$0xff] }
  0xa9   :  { %v87_v7 = vmul.f32 0.00390625, %v73_v6  ;;  %v318_v6 = vld [vmem:[%s1075_s2 + $0x10] sm:$0xff] }
  0xab   :  { %96 = vst.msk [vmem:[#allocation2 + $0x8] sm:$0xff] %vm94_vm1, %v87_v7  ;;  %v106_v9 = vpop.xlane.xlu1 %105  ;;  %v319_v7 = vld [vmem:[%s1075_s2 + $0x18] sm:$0xff] }
  0xac   :  { %121 = vst.msk [vmem:[#allocation2 + $0x8] sm:$0xff] %vm119_vm2, %v106_v9  ;;  %v104_v11 = vpop.xlane.xlu0 %103  ;;  %v321_v9 = vld [vmem:[%s1075_s2 + $0x28] sm:$0xff] }
  0xad   :  { %120 = vst.msk [vmem:[#allocation2] sm:$0xff] %vm119_vm2, %v104_v11  ;;  %v323_v11 = vld [vmem:[%s1075_s2 + $0x38] sm:$0xff] }
  0xae   :  { %200 = vst.msk [vmem:[#allocation2 + $0x8] sm:$0xff] %vm198_vm3, %v191_v8  ;;  %199 = vst.msk [vmem:[#allocation2] sm:$0xff] %vm198_vm3, %v190_v10  ;;  %v320_v8 = vld [vmem:[%s1075_s2 + $0x20] sm:$0xff]  ;;  %v322_v10 = vld [vmem:[%s1075_s2 + $0x30] sm:$0xff]  ;;  %s931_s2 = smov [#allocation6]  }
  0xaf   :  { %v77_v12 = vpop.xlane.xlu1 %76  ;;  %s684_s16 = sshll.u32 %s931_s2, 4  ;;  %s685_s16 = int_to_ptr.vmem [resolvable:$true] %s684_s16 }
  0xb0   :  { %v89_v13 = vmul.f32 0.00390625, %v77_v12  ;;  %v75_v14 = vpop.xlane.xlu0 %74  ;;  %s897_s17 = scalar_lea.vmem %s685_s16, 32  ;;  %p902_p9 = scmp.lt.s32.totalorder %s685_s16, %s685_s16 }
  0xb1   :  { %v88_v15 = vmul.f32 0.00390625, %v75_v14  ;;  %p898_p8 = scmp.ne.s32.totalorder %s685_s16, %s897_s17  ;;  %p903_p10 = scmp.lt.s32.totalorder %s897_s17, %s897_s17 }
  0xb2   :  { %98 = vst.msk [vmem:[#allocation2 + $0x18] sm:$0xff] %vm94_vm1, %v89_v13 }
  0xb3   :  { %97 = vst.msk [vmem:[#allocation2 + $0x10] sm:$0xff] %vm94_vm1, %v88_v15  ;;  %v210_v16 = vpop.xlane.xlu1 %209  ;;  %p904_p11 = por %p903_p10, %p902_p9 }
  0xb4   :  { %225 = vst.msk [vmem:[#allocation2 + $0x8] sm:$0xff] %vm223_vm4, %v210_v16  ;;  %v208_v17 = vpop.xlane.xlu0 %207 }
  0xb5   :  { %224 = vst.msk [vmem:[#allocation2] sm:$0xff] %vm223_vm4, %v208_v17  ;;  %p905_p12 = pnand %p904_p11, %p898_p8 }
  0xb7   :  { %v181_v18 = vpop.xlane.xlu1 %180 }
  0xb8   :  { %v179_v19 = vpop.xlane.xlu0 %178  ;;  %v193_v20 = vmul.f32 0.00390625, %v181_v18 }
  0xb9   :  { %v192_v23 = vmul.f32 0.00390625, %v179_v19 }
  0xbb   :  { %v110_v21 = vpop.xlane.xlu1 %109  ;;  %v233_v22 = vld [vmem:[#allocation2 + $0x8] sm:$0xff] }
  0xbc   :  { %123 = vst.msk [vmem:[#allocation2 + $0x18] sm:$0xff] %vm119_vm2, %v110_v21  ;;  %v108_v24 = vpop.xlane.xlu0 %107  ;;  %v232_v25 = vld [vmem:[#allocation2] sm:$0xff] }
  0xbd   :  { %202 = vst.msk [vmem:[#allocation2 + $0x18] sm:$0xff] %vm198_vm3, %v193_v20  ;;  %v806_v26 = vpack.c.bf16 %v233_v22, %v232_v25 }
  0xbe   :  { %122 = vst.msk [vmem:[#allocation2 + $0x10] sm:$0xff] %vm119_vm2, %v108_v24 }
  0xbf   :  { %201 = vst.msk [vmem:[#allocation2 + $0x10] sm:$0xff] %vm198_vm3, %v192_v23  ;;  %807 = vmatpush3.bf16.msra.mxu0 %v806_v26  ;;  %v81_v27 = vpop.xlane.xlu1 %80 }
  0xc0   :  { %v91_v28 = vmul.f32 0.00390625, %v81_v27  ;;  %v79_v29 = vpop.xlane.xlu0 %78  ;;  %808 = vmatprep.subr.bf16.mxu0 %v926_v51 }
  0xc1   :  { %v90_v30 = vmul.f32 0.00390625, %v79_v29 }
  0xc2   :  { %100 = vst.msk [vmem:[#allocation2 + $0x28] sm:$0xff] %vm94_vm1, %v91_v28 }
  0xc3   :  { %99 = vst.msk [vmem:[#allocation2 + $0x20] sm:$0xff] %vm94_vm1, %v90_v30  ;;  %v214_v31 = vpop.xlane.xlu1 %213 }
  0xc4   :  { %227 = vst.msk [vmem:[#allocation2 + $0x18] sm:$0xff] %vm223_vm4, %v214_v31  ;;  %v212_v32 = vpop.xlane.xlu0 %211 }
  0xc5   :  { %226 = vst.msk [vmem:[#allocation2 + $0x10] sm:$0xff] %vm223_vm4, %v212_v32 }
  0xc7   :  { %v185_v33 = vpop.xlane.xlu1 %184 }
  0xc8   :  { %v183_v34 = vpop.xlane.xlu0 %182  ;;  %v195_v35 = vmul.f32 0.00390625, %v185_v33 }
  0xc9   :  { %v194_v38 = vmul.f32 0.00390625, %v183_v34 }
  0xcb   :  { %v114_v36 = vpop.xlane.xlu1 %113  ;;  %v235_v37 = vld [vmem:[#allocation2 + $0x18] sm:$0xff] }
  0xcc   :  { %125 = vst.msk [vmem:[#allocation2 + $0x28] sm:$0xff] %vm119_vm2, %v114_v36  ;;  %v112_v39 = vpop.xlane.xlu0 %111  ;;  %v234_v40 = vld [vmem:[#allocation2 + $0x10] sm:$0xff] }
  0xcd   :  { %204 = vst.msk [vmem:[#allocation2 + $0x28] sm:$0xff] %vm198_vm3, %v195_v35  ;;  %v809_v41 = vpack.c.bf16 %v235_v37, %v234_v40 }
  0xce   :  { %124 = vst.msk [vmem:[#allocation2 + $0x20] sm:$0xff] %vm119_vm2, %v112_v39 }
  0xcf   :  { %203 = vst.msk [vmem:[#allocation2 + $0x20] sm:$0xff] %vm198_vm3, %v194_v38  ;;  %810 = vmatpush3.bf16.msra.mxu0 %v809_v41  ;;  %v85_v42 = vpop.xlane.xlu1 %84 }
  0xd0   :  { %v93_v43 = vmul.f32 0.00390625, %v85_v42  ;;  %v83_v44 = vpop.xlane.xlu0 %82  ;;  %811 = vmatprep.subr.bf16.mxu0 %v926_v51 }
  0xd1   :  { %v92_v45 = vmul.f32 0.00390625, %v83_v44 }
  0xd2   :  { %102 = vst.msk [vmem:[#allocation2 + $0x38] sm:$0xff] %vm94_vm1, %v93_v43 }
  0xd3   :  { %101 = vst.msk [vmem:[#allocation2 + $0x30] sm:$0xff] %vm94_vm1, %v92_v45  ;;  %v218_v46 = vpop.xlane.xlu1 %217 }
  0xd4   :  { %229 = vst.msk [vmem:[#allocation2 + $0x28] sm:$0xff] %vm223_vm4, %v218_v46  ;;  %v216_v47 = vpop.xlane.xlu0 %215 }
  0xd5   :  { %228 = vst.msk [vmem:[#allocation2 + $0x20] sm:$0xff] %vm223_vm4, %v216_v47 }
  0xd7   :  { %v189_v48 = vpop.xlane.xlu1 %188 }
  0xd8   :  { %v187_v49 = vpop.xlane.xlu0 %186  ;;  %v197_v50 = vmul.f32 0.00390625, %v189_v48 }
  0xd9   :  { %v196_v54 = vmul.f32 0.00390625, %v187_v49 }
  0xdb   :  { %v118_v52 = vpop.xlane.xlu1 %117  ;;  %v237_v53 = vld [vmem:[#allocation2 + $0x28] sm:$0xff] }
  0xdc   :  { %127 = vst.msk [vmem:[#allocation2 + $0x38] sm:$0xff] %vm119_vm2, %v118_v52  ;;  %v116_v55 = vpop.xlane.xlu0 %115  ;;  %v236_v56 = vld [vmem:[#allocation2 + $0x20] sm:$0xff] }
  0xdd   :  { %206 = vst.msk [vmem:[#allocation2 + $0x38] sm:$0xff] %vm198_vm3, %v197_v50  ;;  %v812_v57 = vpack.c.bf16 %v237_v53, %v236_v56 }
  0xde   :  { %126 = vst.msk [vmem:[#allocation2 + $0x30] sm:$0xff] %vm119_vm2, %v116_v55 }
  0xdf   :  { %205 = vst.msk [vmem:[#allocation2 + $0x30] sm:$0xff] %vm198_vm3, %v196_v54  ;;  %813 = vmatpush3.bf16.msra.mxu0 %v812_v57  ;;  %v222_v58 = vpop.xlane.xlu1 %221 }
  0xe0   :  { %231 = vst.msk [vmem:[#allocation2 + $0x38] sm:$0xff] %vm223_vm4, %v222_v58  ;;  %v220_v59 = vpop.xlane.xlu0 %219  ;;  %814 = vmatprep.subr.bf16.mxu0 %v926_v51 }
  0xe1   :  { %230 = vst.msk [vmem:[#allocation2 + $0x30] sm:$0xff] %vm223_vm4, %v220_v59 }
  0xe7   :  { %v239_v60 = vld [vmem:[#allocation2 + $0x38] sm:$0xff] }
  0xe8   :  { %v238_v61 = vld [vmem:[#allocation2 + $0x30] sm:$0xff] }
  0xe9   :  { %v815_v62 = vpack.c.bf16 %v239_v60, %v238_v61 }
  0xeb   :  { %816 = vmatpush3.bf16.msra.mxu0 %v815_v62 }
  0xee   :  { %770 = vmatmul.mubr.msk.f32.vlgmr.msra.gmra.mrb[0].mxu0 %vm241_vm5, %v240_v63 }
  0xef   :  { %774 = vmatprep.mubr.msk.f32.mxu0 %vm324_vm6, %v316_v0 }
 0x1c1   :  { %v311_v2 = vpop.f32.mrb[0].mxu0 }
 0x1c2   :  { %v315_v3 = vmax.f32 %v311_v2, 0.0  ;;  %v771_v4 = vpop.f32.mrb[1].mxu0 }
 0x1c4   :  { %772 = vmatprep.subr.msk.mxu0 %vm349_vm7, %v315_v3 }
 0x1c5   :  { %773 = vmatpush3.msk.msra.mxu0 %vm349_vm7, %v315_v3 }
 0x1c6   :  { %775 = vmatmul.mubr.msk.f32.vlgmr.msra.gmra.mrb[2].mxu0 %vm324_vm6, %v317_v5 }
 0x1c7   :  { %777 = vmatprep.mubr.msk.f32.mxu0 %vm324_vm6, %v318_v6 }
 0x1ca   :  { %778 = vmatmul.mubr.msk.f32.gmra.mrb[4].mxu0 %vm324_vm6, %v319_v7 }
 0x1cb   :  { %780 = vmatprep.mubr.msk.f32.mxu0 %vm324_vm6, %v320_v8 }
 0x1ce   :  { %781 = vmatmul.mubr.msk.f32.gmra.mrb[6].mxu0 %vm324_vm6, %v321_v9 }
 0x1cf   :  { %783 = vmatprep.mubr.msk.f32.mxu0 %vm324_vm6, %v322_v10 }
 0x1d2   :  { %784 = vmatmul.mubr.msk.f32.gmra.mrb[8].mxu0 %vm324_vm6, %v323_v11  ;;  %v546_v11 = vlaneseq }
 0x299   :  { %v776_v12 = vpop.f32.mrb[2].mxu0 }
 0x29a   :  { %468 = vrot.lane.b32.xlu1 %v776_v12, %s929_s15  ;;  %v419_v13 = vpop.f32.mrb[3].mxu0 }
 0x29b   :  { %466 = vrot.lane.b32.xlu0 %v419_v13, %s929_s15 }
 0x29d   :  { %v779_v14 = vpop.f32.mrb[4].mxu0 }
 0x29e   :  { %v429_v15 = vpop.f32.mrb[5].mxu0 }
 0x29f   :  { %470 = vrot.lane.b32.xlu1 %v429_v15, %s929_s15 }
 0x2a1   :  { %v782_v16 = vpop.f32.mrb[6].mxu0 }
 0x2a2   :  { %v439_v17 = vpop.f32.mrb[7].mxu0 }
 0x2a3   :  { %472 = vrot.lane.b32.xlu1 %v779_v14, %s929_s15  ;;  %474 = vrot.lane.b32.xlu0 %v439_v17, %s929_s15 }
 0x2a5   :  { %v785_v18 = vpop.f32.mrb[8].mxu0 }
 0x2a6   :  { %v449_v19 = vpop.f32.mrb[9].mxu0 }
 0x2a7   :  { %476 = vrot.lane.b32.xlu1 %v782_v16, %s929_s15  ;;  %478 = vrot.lane.b32.xlu0 %v449_v19, %s929_s15 }
 0x2ab   :  { %480 = vrot.lane.b32.xlu1 %v785_v18, %s929_s15 }
 0x30c   :  { %v469_v20 = vpop.permute.xlu1 %468 }
 0x30d   :  { %v491_v21 = vadd.f32 %v776_v12, %v469_v20  ;;  %v467_v22 = vpop.permute.xlu0 %466  ;;  %v547_v12 = vshrl.u32 %v546_v11, 7 }
 0x30e   :  { %v490_v23 = vadd.f32 %v467_v22, %v419_v13  ;;  %v549_v13 = vand.u32 127, %v546_v11 }
 0x30f   :  { %v709_v24 = vmul.f32 -1.442695, %v491_v21 }
 0x310   :  { %v708_v25 = vmul.f32 -1.442695, %v490_v23  ;;  %vm550_vm10 = vcmp.eq.s32.totalorder %v547_v12, %v549_v13 }
 0x311   :  { %843 = vpow2.f32 %v709_v24  ;;  %v471_v26 = vpop.permute.xlu1 %470 }
 0x312   :  { %845 = vpow2.f32 %v708_v25  ;;  %v492_v27 = vadd.f32 %v471_v26, %v429_v15  ;;  %v930_v15 = vmov 1966171168  }
 0x314   :  { %v710_v28 = vmul.f32 -1.442695, %v492_v27 }
 0x315   :  { %v473_v29 = vpop.permute.xlu1 %472  ;;  %v475_v30 = vpop.permute.xlu0 %474 }
 0x316   :  { %847 = vpow2.f32 %v710_v28  ;;  %v493_v31 = vadd.f32 %v779_v14, %v473_v29  ;;  %v494_v32 = vadd.f32 %v475_v30, %v439_v17  ;;  %v716_v14 = vsel %vm550_vm10, 1.0, %v928_v1 }
 0x318   :  { %v711_v33 = vmul.f32 -1.442695, %v493_v31  ;;  %v712_v34 = vmul.f32 -1.442695, %v494_v32 }
 0x319   :  { %v477_v35 = vpop.permute.xlu1 %476  ;;  %v479_v36 = vpop.permute.xlu0 %478 }
 0x31a   :  { %849 = vpow2.f32 %v711_v33  ;;  %v495_v37 = vadd.f32 %v782_v16, %v477_v35  ;;  %v496_v38 = vadd.f32 %v479_v36, %v449_v19  ;;  %v653_v16 = vunpack.c.l.s4 %v930_v15 }
 0x31b   :  { %v844_v39 = vpop.eup %843  ;;  %851 = vpow2.f32 %v712_v34 }
 0x31c   :  { %v846_v40 = vpop.eup %845  ;;  %v523_v41 = vadd.f32 1.0, %v844_v39  ;;  %v713_v42 = vmul.f32 -1.442695, %v495_v37  ;;  %v714_v44 = vmul.f32 -1.442695, %v496_v38  ;;  %v654_v17 = vunpack.c.0.s8 %v653_v16 }
 0x31d   :  { %v522_v43 = vadd.f32 1.0, %v846_v40  ;;  %v481_v45 = vpop.permute.xlu1 %480 }
 0x31e   :  { %853 = vrcp.f32 %v523_v41  ;;  %v497_v46 = vadd.f32 %v785_v18, %v481_v45  ;;  %v657_v18 = vsub.s32 %v654_v17, %v547_v12 }
 0x31f   :  { %855 = vrcp.f32 %v522_v43 }
 0x320   :  { %v848_v47 = vpop.eup %847  ;;  %857 = vpow2.f32 %v713_v42  ;;  %v715_v48 = vmul.f32 -1.442695, %v497_v46 }
 0x321   :  { %859 = vpow2.f32 %v714_v44  ;;  %v524_v49 = vadd.f32 1.0, %v848_v47 }
 0x322   :  { %861 = vpow2.f32 %v715_v48 }
 0x323   :  { %863 = vrcp.f32 %v524_v49 }
 0x324   :  { %v850_v50 = vpop.eup %849 }
 0x325   :  { %v852_v52 = vpop.eup %851  ;;  %v525_v53 = vadd.f32 1.0, %v850_v50 }
 0x326   :  { %v526_v55 = vadd.f32 1.0, %v852_v52 }
 0x327   :  { %865 = vrcp.f32 %v525_v53 }
 0x328   :  { %v854_v54 = vpop.eup %853  ;;  %867 = vrcp.f32 %v526_v55 }
 0x329   :  { %v856_v56 = vpop.eup %855 }
 0x32a   :  { %v858_v58 = vpop.eup %857  ;;  %v818_v59 = vpack.c.bf16 %v854_v54, %v856_v56 }
 0x32b   :  { %v860_v60 = vpop.eup %859  ;;  %v527_v61 = vadd.f32 1.0, %v858_v58 }
 0x32c   :  { %v862_v62 = vpop.eup %861  ;;  %v528_v63 = vadd.f32 1.0, %v860_v60  ;;  %820 = vmatpush3.bf16.xpose.msk.msra.mxu1 %vm1042_vm9, %v818_v59 }
 0x32d   :  { %869 = vrcp.f32 %v527_v61  ;;  %v529_v0 = vadd.f32 1.0, %v862_v62  ;;  %821 = vmatprep.subr.bf16.mxu1 %v926_v51  ;;  %v864_v2 = vpop.eup %863 }
 0x32e   :  { %871 = vrcp.f32 %v528_v63 }
 0x32f   :  { %873 = vrcp.f32 %v529_v0 }
 0x331   :  { %v866_v3 = vpop.eup %865 }
 0x332   :  { %v822_v4 = vpack.c.bf16 %v866_v3, %v864_v2  ;;  %v868_v5 = vpop.eup %867 }
 0x334   :  { %824 = vmatpush3.bf16.xpose.msk.msra.mxu1 %vm1042_vm9, %v822_v4 }
 0x335   :  { %825 = vmatprep.subr.bf16.mxu1 %v926_v51 }
 0x337   :  { %v870_v6 = vpop.eup %869 }
 0x338   :  { %v872_v7 = vpop.eup %871  ;;  %v826_v8 = vpack.c.bf16 %v870_v6, %v868_v5 }
 0x339   :  { %v874_v9 = vpop.eup %873 }
 0x33a   :  { %v830_v10 = vpack.c.bf16 %v874_v9, %v872_v7 }
 0x33c   :  { %828 = vmatpush3.bf16.xpose.msk.msra.mxu1 %vm1042_vm9, %v826_v8 }
 0x33d   :  { %829 = vmatprep.subr.bf16.mxu1 %v926_v51 }
 0x344   :  { %832 = vmatpush3.bf16.xpose.msk.msra.mxu1 %vm1042_vm9, %v830_v10 }
 0x34b   :  { %803 = vmatmul.mubr.msk.f32.vlgmr.msra.gmra.mrb[0].mxu1 %vm553_vm8, %v716_v14 }
 0x41e   :  { %v647_v19 = vpop.f32.mrb[0].mxu1 }
 0x41f   :  { %v658_v20 = vrot.slane %v647_v19, %v657_v18  ;;  %v804_v21 = vpop.f32.mrb[1].mxu1 }
 0x421   :  { %v659_v51 = vcombine.high %v658_v20, %v658_v20  ;;  %v666_v22 = vrot.slane %v658_v20, %v657_v18 }
 0x423   :  { %v673_v23 = vrot.slane %v659_v51, %v657_v18  ;;  %677 = vst.msk [vmem:[#allocation6] sm:$0x1] %vm676_vm11, %v666_v22 }
 0x425   :  { %678 = vst.msk [vmem:[#allocation6 + $0x1] sm:$0x1] %vm676_vm11, %v673_v23 }
 0x426   :  { %908 = shalt.err (!%p905_p12)
}
 0x427   :  { %s909_s20 = scalar_lea.hbm %s1076_s3, 32 }
 0x428   :  { %p910_p13 = scmp.ne.s32.totalorder %s1076_s3, %s909_s20  ;;  %p913_p0 = scmp.lt.u32.totalorder %s909_s20, %s1076_s3 }
 0x42a   :  { %p915_p1 = pnand %p913_p0, %p910_p13 }
 0x42c   :  { %918 = shalt.err (!%p915_p1)
}
 0x42d   :  { %s932_s0 = smov 1  }
 0x42e   :  { %690 = dma.vmem_to_hbm [thread:$0]  %s685_s16, 32, %s1076_s3, [#allocation5], %s925_s23, %s925_s23, %s932_s0  }
 0x42f   :  { %921 = dma.done.wait [#allocation5], 32  }
 0x430   :  { %922 = vsyncadd [#allocation5], 4294967264 }
 0x431   :  { %694 = vsyncpa [#allocation4], 1 }
 0x432   :  { %695 = vsyncpa [#allocation5], 1 }

</bundles_post_ra>
